<compile_context>
chip_gen: v6e
topology: v6e:2x2x1
jax: 0.10.0
libtpu: 0.0.40
codegen_flags: <defaults>
</compile_context>

<pallas_src>
import functools

import jax
import jax.numpy as jnp
from jax.experimental import pallas as pl
from jax.experimental.pallas import tpu as pltpu


def _round_up(n, m):
    return ((n + m - 1) // m) * m


def _mlp_kernel(x_ref, w1_ref, b1_ref, w2_ref, b2_ref, w3_ref, b3_ref,
                out_ref, h1_ref, h2_ref):
    # fc1: (bm, D) @ (D, H1) + (1, H1)  -- f32 accumulation on the MXU.
    h1 = jnp.dot(x_ref[...], w1_ref[...],
                 preferred_element_type=jnp.float32) + b1_ref[...]
    h1_ref[...] = h1.astype(h1_ref.dtype)            # hidden1_output (pre-ReLU)
    a1 = jnp.maximum(h1, 0.0).astype(w2_ref.dtype)   # F.relu, back to compute dtype

    # fc2: (bm, H1) @ (H1, H2) + (1, H2)
    h2 = jnp.dot(a1, w2_ref[...],
                 preferred_element_type=jnp.float32) + b2_ref[...]
    h2_ref[...] = h2.astype(h2_ref.dtype)            # hidden2_output (pre-ReLU)
    a2 = jnp.maximum(h2, 0.0).astype(w3_ref.dtype)

    # fc3: (bm, H2) @ (H2, C) + (1, C)
    out = jnp.dot(a2, w3_ref[...],
                  preferred_element_type=jnp.float32) + b3_ref[...]
    out_ref[...] = out.astype(out_ref.dtype)


def prepare_params(params, *, use_bf16=False):
    """One-time parameter preparation (cache the result across forward calls).

    params = (w1 (D,200), b1 (200,), w2 (200,100), b2 (100,), w3 (100,C), b3 (C,)).
    Weights are cast to the compute dtype; biases stay f32 (added to the f32
    accumulator) and are reshaped to (1, H) for lane-wise broadcast.
    """
    w1, b1, w2, b2, w3, b3 = params
    cdt = jnp.bfloat16 if use_bf16 else jnp.float32
    return (w1.astype(cdt), b1.reshape(1, -1).astype(jnp.float32),
            w2.astype(cdt), b2.reshape(1, -1).astype(jnp.float32),
            w3.astype(cdt), b3.reshape(1, -1).astype(jnp.float32))


@functools.partial(jax.jit, static_argnames=("block_batch", "out_dtype"))
def student_mlp_forward(x, prepared, *, block_batch=1024, out_dtype=jnp.float32):
    """x: (B, com_representation_size). prepared: output of prepare_params().

    Returns (logits (B, C), hidden1 (B, 200), hidden2 (B, 100)) in out_dtype.
    """
    w1, b1, w2, b2, w3, b3 = prepared
    B, D = x.shape
    H1 = w1.shape[1]          # 200
    H2 = w2.shape[1]          # 100
    C = w3.shape[1]           # classes

    compute_dtype = w1.dtype
    x = x.astype(compute_dtype)   # no-op for the f32 path

    # Batch tile: multiple of 8 sublanes, <= block_batch, and small enough that
    # there are >= 2 grid steps whenever B allows it (megacore on v7x).
    bm = min(_round_up(block_batch, 8), _round_up(pl.cdiv(B, 2), 8))
    bm = max(bm, 8)
    n_tiles = pl.cdiv(B, bm)      # ragged last tile is masked by Pallas

    # Realistic VMEM budget: double-buffered streamed tiles + resident weights
    # + f32 intermediates + headroom, capped well below v7x's 64 MiB.
    lane = lambda n: _round_up(n, 128)
    in_b = jnp.dtype(compute_dtype).itemsize
    out_b = jnp.dtype(out_dtype).itemsize
    row_bytes = lane(D) * in_b + (lane(H1) + lane(H2) + lane(C)) * out_b
    interm_bytes = (lane(H1) + lane(H2) + lane(C)) * 4
    weight_bytes = (lane(D) * lane(H1) + lane(H1) * lane(H2)
                    + lane(H2) * lane(C)) * in_b + (lane(H1) + lane(H2) + lane(C)) * 4
    vmem_need = 2 * bm * row_bytes + bm * interm_bytes + 2 * weight_bytes + (4 << 20)
    vmem_limit = int(min(max(vmem_need, 8 << 20), 48 << 20))

    # Activation tiles move with the batch grid step; weights/biases are pinned
    # (constant block index -> fetched once, VMEM-resident across steps).
    tile = lambda r, c: pl.BlockSpec((r, c), lambda i: (i, 0))
    pinned = lambda r, c: pl.BlockSpec((r, c), lambda i: (0, 0))

    flops = 2 * B * (D * H1 + H1 * H2 + H2 * C)
    bytes_accessed = (B * D * in_b
                      + (D * H1 + H1 * H2 + H2 * C) * in_b
                      + (H1 + H2 + C) * 4
                      + B * (C + H1 + H2) * out_b)

    out, h1, h2 = pl.pallas_call(
        _mlp_kernel,
        out_shape=(
            jax.ShapeDtypeStruct((B, C), out_dtype),    # logits, unpadded lanes
            jax.ShapeDtypeStruct((B, H1), out_dtype),   # hidden1 (pre-ReLU)
            jax.ShapeDtypeStruct((B, H2), out_dtype),   # hidden2 (pre-ReLU)
        ),
        grid=(n_tiles,),
        in_specs=[
            tile(bm, D),
            pinned(D, H1), pinned(1, H1),
            pinned(H1, H2), pinned(1, H2),
            pinned(H2, C), pinned(1, C),
        ],
        out_specs=(tile(bm, C), tile(bm, H1), tile(bm, H2)),
        compiler_params=pltpu.CompilerParams(
            dimension_semantics=("parallel",),   # 2-TC sharding on v7x
            vmem_limit_bytes=vmem_limit),
        cost_estimate=pl.CostEstimate(
            flops=flops, transcendentals=0, bytes_accessed=bytes_accessed),
    )(x, w1, b1, w2, b2, w3, b3)

    return out, h1, h2


def init_params(key, com_representation_size, classes, *, random_bias=False):
    """Matches StudentMLP.initialize_weights for nn.Linear: weight ~ N(0, 0.1),
    bias = 0 (random_bias=True used only to exercise the bias add in tests).
    Weights stored as (in, out)."""
    k1, k2, k3, k4, k5, k6 = jax.random.split(key, 6)
    w1 = 0.1 * jax.random.normal(k1, (com_representation_size, 200), jnp.float32)
    w2 = 0.1 * jax.random.normal(k2, (200, 100), jnp.float32)
    w3 = 0.1 * jax.random.normal(k3, (100, classes), jnp.float32)
    if random_bias:
        b1 = 0.1 * jax.random.normal(k4, (200,), jnp.float32)
        b2 = 0.1 * jax.random.normal(k5, (100,), jnp.float32)
        b3 = 0.1 * jax.random.normal(k6, (classes,), jnp.float32)
    else:
        b1 = jnp.zeros((200,), jnp.float32)
        b2 = jnp.zeros((100,), jnp.float32)
        b3 = jnp.zeros((classes,), jnp.float32)
    return (w1, b1, w2, b2, w3, b3)


def _reference(x, params):
    w1, b1, w2, b2, w3, b3 = params
    r1 = x @ w1 + b1
    r2 = jnp.maximum(r1, 0.0) @ w2 + b2
    out = jnp.maximum(r2, 0.0) @ w3 + b3
    return out, r1, r2


if __name__ == "__main__":
    key = jax.random.PRNGKey(0)
    kx, kx2, kp = jax.random.split(key, 3)

    batch = 8
    com_representation_size = 32
    classes = 10

    x = jax.random.normal(kx, (batch, com_representation_size), jnp.float32)
    params = init_params(kp, com_representation_size, classes, random_bias=True)
    ref, r1, r2 = _reference(x, params)

    # --- f32 compute path: tight tolerance -------------------------------
    prep_f32 = prepare_params(params, use_bf16=False)
    logits, h1, h2 = student_mlp_forward(x, prep_f32)
    jax.block_until_ready((logits, h1, h2))
    assert logits.shape == (batch, classes)
    assert h1.shape == (batch, 200) and h2.shape == (batch, 100)
    assert jnp.allclose(logits, ref, atol=1e-4, rtol=1e-4)
    assert jnp.allclose(h1, r1, atol=1e-4, rtol=1e-4)
    assert jnp.allclose(h2, r2, atol=1e-4, rtol=1e-4)

    # --- ragged batch (B=13, two grid tiles, masked last tile) ------------
    x13 = jax.random.normal(kx2, (13, com_representation_size), jnp.float32)
    ref13, r1_13, r2_13 = _reference(x13, params)
    lg13, h1_13, h2_13 = student_mlp_forward(x13, prep_f32)
    jax.block_until_ready((lg13, h1_13, h2_13))
    assert lg13.shape == (13, classes)
    assert jnp.allclose(lg13, ref13, atol=1e-4, rtol=1e-4)
    assert jnp.allclose(h1_13, r1_13, atol=1e-4, rtol=1e-4)
    assert jnp.allclose(h2_13, r2_13, atol=1e-4, rtol=1e-4)

    # --- bf16 compute path (f32 MXU accumulation): loose tolerance --------
    prep_bf16 = prepare_params(params, use_bf16=True)
    lgb, h1b, h2b = student_mlp_forward(x, prep_bf16)
    jax.block_until_ready((lgb, h1b, h2b))
    assert jnp.allclose(lgb, ref, atol=5e-2, rtol=5e-2)
    assert jnp.allclose(h1b, r1, atol=5e-2, rtol=5e-2)
    assert jnp.allclose(h2b, r2, atol=5e-2, rtol=5e-2)

    print("KERNEL_OK")
</pallas_src>

<mosaic_0001>
module attributes {stable_mosaic.version = 11 : i64} {
  func.func @_mlp_kernel(%arg0: i32, %arg1: memref<8x32xf32, #tpu.memory_space<vmem>>, %arg2: memref<32x200xf32, #tpu.memory_space<vmem>>, %arg3: memref<1x200xf32, #tpu.memory_space<vmem>>, %arg4: memref<200x100xf32, #tpu.memory_space<vmem>>, %arg5: memref<1x100xf32, #tpu.memory_space<vmem>>, %arg6: memref<100x10xf32, #tpu.memory_space<vmem>>, %arg7: memref<1x10xf32, #tpu.memory_space<vmem>>, %arg8: memref<8x10xf32, #tpu.memory_space<vmem>>, %arg9: memref<8x200xf32, #tpu.memory_space<vmem>>, %arg10: memref<8x100xf32, #tpu.memory_space<vmem>>) attributes {dimension_semantics = [#tpu.dimension_semantics<parallel>], iteration_bounds = array<i64: 1>, scalar_prefetch = 0 : i64, scratch_operands = 0 : i64, tpu.core_type = #tpu.core_type<tc>, window_params = [{transform_indices = @transform_0, window_bounds = array<i64: 8, 32>}, {pipeline_mode = #tpu.pipeline_mode<synchronous>, transform_indices = @transform_1, window_bounds = array<i64: 32, 200>}, {pipeline_mode = #tpu.pipeline_mode<synchronous>, transform_indices = @transform_2, window_bounds = array<i64: 1, 200>}, {pipeline_mode = #tpu.pipeline_mode<synchronous>, transform_indices = @transform_3, window_bounds = array<i64: 200, 100>}, {pipeline_mode = #tpu.pipeline_mode<synchronous>, transform_indices = @transform_4, window_bounds = array<i64: 1, 100>}, {pipeline_mode = #tpu.pipeline_mode<synchronous>, transform_indices = @transform_5, window_bounds = array<i64: 100, 10>}, {pipeline_mode = #tpu.pipeline_mode<synchronous>, transform_indices = @transform_6, window_bounds = array<i64: 1, 10>}, {transform_indices = @transform_7, window_bounds = array<i64: 8, 10>}, {transform_indices = @transform_8, window_bounds = array<i64: 8, 200>}, {transform_indices = @transform_9, window_bounds = array<i64: 8, 100>}]} {
    %c0 = arith.constant 0 : index
    %c0_0 = arith.constant 0 : index
    %0 = vector.load %arg1[%c0, %c0_0] : memref<8x32xf32, #tpu.memory_space<vmem>>, vector<8x32xf32>
    %c0_1 = arith.constant 0 : index
    %c0_2 = arith.constant 0 : index
    %1 = vector.load %arg2[%c0_1, %c0_2] : memref<32x200xf32, #tpu.memory_space<vmem>>, vector<32x200xf32>
    %cst = arith.constant dense<0.000000e+00> : vector<8x200xf32>
    %2 = tpu.matmul %0, %1, %cst {dimension_numbers = #tpu.dot_dimension_numbers<[1], [0], [0], [1], [0, 0, 1, 1], [], []>} : vector<8x32xf32>, vector<32x200xf32>, vector<8x200xf32> -> vector<8x200xf32>
    %c0_3 = arith.constant 0 : index
    %c0_4 = arith.constant 0 : index
    %3 = vector.load %arg3[%c0_3, %c0_4] : memref<1x200xf32, #tpu.memory_space<vmem>>, vector<1x200xf32>
    %4 = vector.broadcast %3 : vector<1x200xf32> to vector<8x200xf32>
    %5 = arith.addf %2, %4 : vector<8x200xf32>
    %c0_5 = arith.constant 0 : index
    %c0_6 = arith.constant 0 : index
    %6 = vector.load %arg9[%c0_5, %c0_6] : memref<8x200xf32, #tpu.memory_space<vmem>>, vector<8x200xf32>
    tpu.vector_store %arg9[%c0_5, %c0_6], %5 {strides = array<i32>} : memref<8x200xf32, #tpu.memory_space<vmem>>, vector<8x200xf32>,
    %cst_7 = arith.constant 0.000000e+00 : f32
    %7 = vector.broadcast %cst_7 : f32 to vector<8x200xf32>
    %8 = arith.maximumf %5, %7 : vector<8x200xf32>
    %c0_8 = arith.constant 0 : index
    %c0_9 = arith.constant 0 : index
    %9 = vector.load %arg4[%c0_8, %c0_9] : memref<200x100xf32, #tpu.memory_space<vmem>>, vector<200x100xf32>
    %cst_10 = arith.constant dense<0.000000e+00> : vector<8x100xf32>
    %10 = tpu.matmul %8, %9, %cst_10 {dimension_numbers = #tpu.dot_dimension_numbers<[1], [0], [0], [1], [0, 0, 1, 1], [], []>} : vector<8x200xf32>, vector<200x100xf32>, vector<8x100xf32> -> vector<8x100xf32>
    %c0_11 = arith.constant 0 : index
    %c0_12 = arith.constant 0 : index
    %11 = vector.load %arg5[%c0_11, %c0_12] : memref<1x100xf32, #tpu.memory_space<vmem>>, vector<1x100xf32>
    %12 = vector.broadcast %11 : vector<1x100xf32> to vector<8x100xf32>
    %13 = arith.addf %10, %12 : vector<8x100xf32>
    %c0_13 = arith.constant 0 : index
    %c0_14 = arith.constant 0 : index
    %14 = vector.load %arg10[%c0_13, %c0_14] : memref<8x100xf32, #tpu.memory_space<vmem>>, vector<8x100xf32>
    tpu.vector_store %arg10[%c0_13, %c0_14], %13 {strides = array<i32>} : memref<8x100xf32, #tpu.memory_space<vmem>>, vector<8x100xf32>,
    %cst_15 = arith.constant 0.000000e+00 : f32
    %15 = vector.broadcast %cst_15 : f32 to vector<8x100xf32>
    %16 = arith.maximumf %13, %15 : vector<8x100xf32>
    %c0_16 = arith.constant 0 : index
    %c0_17 = arith.constant 0 : index
    %17 = vector.load %arg6[%c0_16, %c0_17] : memref<100x10xf32, #tpu.memory_space<vmem>>, vector<100x10xf32>
    %cst_18 = arith.constant dense<0.000000e+00> : vector<8x10xf32>
    %18 = tpu.matmul %16, %17, %cst_18 {dimension_numbers = #tpu.dot_dimension_numbers<[1], [0], [0], [1], [0, 0, 1, 1], [], []>} : vector<8x100xf32>, vector<100x10xf32>, vector<8x10xf32> -> vector<8x10xf32>
    %c0_19 = arith.constant 0 : index
    %c0_20 = arith.constant 0 : index
    %19 = vector.load %arg7[%c0_19, %c0_20] : memref<1x10xf32, #tpu.memory_space<vmem>>, vector<1x10xf32>
    %20 = vector.broadcast %19 : vector<1x10xf32> to vector<8x10xf32>
    %21 = arith.addf %18, %20 : vector<8x10xf32>
    %c0_21 = arith.constant 0 : index
    %c0_22 = arith.constant 0 : index
    %22 = vector.load %arg8[%c0_21, %c0_22] : memref<8x10xf32, #tpu.memory_space<vmem>>, vector<8x10xf32>
    tpu.vector_store %arg8[%c0_21, %c0_22], %21 {strides = array<i32>} : memref<8x10xf32, #tpu.memory_space<vmem>>, vector<8x10xf32>,
    return
  }
  func.func @transform_0(%arg0: i32) -> (i32, i32) {
    %c0_i32 = arith.constant 0 : i32
    %c0_i32_0 = arith.constant 0 : i32
    return %arg0, %c0_i32 : i32, i32
  }
  func.func @transform_1(%arg0: i32) -> (i32, i32) {
    %c0_i32 = arith.constant 0 : i32
    %c0_i32_0 = arith.constant 0 : i32
    %c0_i32_1 = arith.constant 0 : i32
    return %c0_i32, %c0_i32_0 : i32, i32
  }
  func.func @transform_2(%arg0: i32) -> (i32, i32) {
    %c0_i32 = arith.constant 0 : i32
    %c0_i32_0 = arith.constant 0 : i32
    %c0_i32_1 = arith.constant 0 : i32
    return %c0_i32, %c0_i32_0 : i32, i32
  }
  func.func @transform_3(%arg0: i32) -> (i32, i32) {
    %c0_i32 = arith.constant 0 : i32
    %c0_i32_0 = arith.constant 0 : i32
    %c0_i32_1 = arith.constant 0 : i32
    return %c0_i32, %c0_i32_0 : i32, i32
  }
  func.func @transform_4(%arg0: i32) -> (i32, i32) {
    %c0_i32 = arith.constant 0 : i32
    %c0_i32_0 = arith.constant 0 : i32
    %c0_i32_1 = arith.constant 0 : i32
    return %c0_i32, %c0_i32_0 : i32, i32
  }
  func.func @transform_5(%arg0: i32) -> (i32, i32) {
    %c0_i32 = arith.constant 0 : i32
    %c0_i32_0 = arith.constant 0 : i32
    %c0_i32_1 = arith.constant 0 : i32
    return %c0_i32, %c0_i32_0 : i32, i32
  }
  func.func @transform_6(%arg0: i32) -> (i32, i32) {
    %c0_i32 = arith.constant 0 : i32
    %c0_i32_0 = arith.constant 0 : i32
    %c0_i32_1 = arith.constant 0 : i32
    return %c0_i32, %c0_i32_0 : i32, i32
  }
  func.func @transform_7(%arg0: i32) -> (i32, i32) {
    %c0_i32 = arith.constant 0 : i32
    %c0_i32_0 = arith.constant 0 : i32
    return %arg0, %c0_i32 : i32, i32
  }
  func.func @transform_8(%arg0: i32) -> (i32, i32) {
    %c0_i32 = arith.constant 0 : i32
    %c0_i32_0 = arith.constant 0 : i32
    return %arg0, %c0_i32 : i32, i32
  }
  func.func @transform_9(%arg0: i32) -> (i32, i32) {
    %c0_i32 = arith.constant 0 : i32
    %c0_i32_0 = arith.constant 0 : i32
    return %arg0, %c0_i32 : i32, i32
  }
}

</mosaic_0001>

<bundles_post_ra>
// kernel: student_mlp_forward.1
= control target key start
LH: loop header
LB: loop body
LE: loop exit
PB: predicated region body
PF: predicated region fallthrough
CT: control target
= control target key end

     0   :  { %15 = vsyncpa [#allocation3], 0  ;;  %s723_s0 = inlined_call_operand.vmem [shape: f32[8,32], index: 0, kind: input, shape index: {}]   ;;  %s724_s1 = inlined_call_operand.vmem [shape: f32[32,200], index: 1, kind: input, shape index: {}]   ;;  %s725_s2 = inlined_call_operand.vmem [shape: f32[1,200], index: 2, kind: input, shape index: {}]   ;;  %s726_s3 = inlined_call_operand.hbm [shape: f32[200,100], index: 3, kind: input, shape index: {}]   ;;  %s727_s4 = inlined_call_operand.vmem [shape: f32[1,100], index: 4, kind: input, shape index: {}]   ;;  %s728_s5 = inlined_call_operand.vmem [shape: f32[100,10], index: 5, kind: input, shape index: {}]   ;;  %s729_s6 = inlined_call_operand.vmem [shape: f32[1,10], index: 6, kind: input, shape index: {}]   ;;  %s730_s7 = inlined_call_operand.hbm [shape: f32[8,10], index: 7, kind: output, shape index: {0}]   ;;  %s731_s8 = inlined_call_operand.hbm [shape: f32[8,200], index: 8, kind: output, shape index: {1}]   ;;  %s732_s9 = inlined_call_operand.hbm [shape: f32[8,100], index: 9, kind: output, shape index: {2}]  }
   0x1   :  { %16 = vsyncpa [#allocation4], 0 }
   0x2   :  { %17 = vsyncpa [#allocation7], 0  ;;  %s538_s30 = smov [#allocation2]  }
   0x3   :  { %s29_s10 = sshll.u32 %s538_s30, 4  ;;  %s30_s10 = int_to_ptr.vmem [resolvable:$true] %s29_s10 }
   0x4   :  { %s460_s11 = scalar_lea.vmem %s30_s10, 3200  ;;  %p465_p1 = scmp.lt.s32.totalorder %s30_s10, %s30_s10 }
   0x5   :  { %p461_p0 = scmp.ne.s32.totalorder %s30_s10, %s460_s11  ;;  %p466_p2 = scmp.lt.s32.totalorder %s460_s11, %s460_s11 }
   0x7   :  { %p467_p3 = por %p466_p2, %p465_p1 }
   0x9   :  { %p468_p4 = pnand %p467_p3, %p461_p0 }
   0xb   :  { %471 = shalt.err (!%p468_p4)
}
   0xc   :  { %s539_s12 = smov 128   ;;  %s540_s13 = smov 8  }
   0xd   :  { %35 = dma.hbm_to_vmem [thread:$0]  %s726_s3, 3200, %s30_s10, [#allocation3], %s539_s12, %s539_s12, %s540_s13  }
   0xe   :  { %532 = dma.done.wait [#allocation3], 3200  }
   0xf   :  { %533 = vsyncadd [#allocation3], 4294964096  ;;  %v541_v0 = vmov 0.0   ;;  %v53_v1 = vld [vmem:[%s724_s1 + $0x38] sm:$0xff]  ;;  %v52_v2 = vld [vmem:[%s724_s1 + $0x30] sm:$0xff]  ;;  %vm66_vm0 = vcmask 261120   ;;  %v56_v45 = vlaneseq }
  0x10   :  { %134 = vmatprep.mubr.f32.mxu0 %v541_v0  ;;  %181 = vmatprep.subr.mxu1 %v541_v0  ;;  %v51_v3 = vld [vmem:[%s724_s1 + $0x28] sm:$0xff]  ;;  %v50_v4 = vld [vmem:[%s724_s1 + $0x20] sm:$0xff]  ;;  %v49_v5 = vld [vmem:[%s724_s1 + $0x18] sm:$0xff]  ;;  %vm277_vm1 = vcmask 1043456   ;;  %vm142_vm2 = vcmask 588800   ;;  %vm542_vm3 = vmmov 0  }
  0x11   :  { %94 = vmatprep.subr.mxu0 %v53_v1  ;;  %v48_v6 = vld [vmem:[%s724_s1 + $0x10] sm:$0xff]  ;;  %v161_v7 = vld [vmem:[#allocation2 + $0x78] sm:$0xff]  ;;  %v47_v9 = vld [vmem:[%s724_s1 + $0x8] sm:$0xff]  ;;  %v57_v46 = vshrl.u32 %v56_v45, 7  ;;  %vm251_vm4 = vcmask 818176   ;;  %s543_s15 = smov [#allocation6]  }
  0x12   :  { %95 = vmatpush1.msra.mxu0 %v52_v2  ;;  %v160_v8 = vld [vmem:[#allocation2 + $0x70] sm:$0xff]  ;;  %182 = vmatpush1.msra.mxu1 %v161_v7  ;;  %v46_v10 = vld [vmem:[%s724_s1] sm:$0xff]  ;;  %v159_v11 = vld [vmem:[#allocation2 + $0x68] sm:$0xff]  ;;  %s369_s16 = sshll.u32 %s543_s15, 4  ;;  %s370_s16 = int_to_ptr.vmem [resolvable:$true] %s369_s16 }
  0x13   :  { %96 = vmatprep.subr.mxu0 %v51_v3  ;;  %183 = vmatprep.subr.mxu1 %v541_v0  ;;  %v45_v12 = vld [vmem:[%s723_s0] sm:$0xff]  ;;  %v157_v14 = vld [vmem:[#allocation2 + $0x58] sm:$0xff]  ;;  %v156_v15 = vld [vmem:[#allocation2 + $0x50] sm:$0xff]  ;;  %v58_v47 = vsub.s32 0, %v57_v46  ;;  %v62_v49 = vsub.s32 1, %v57_v46  ;;  %s472_s17 = scalar_lea.vmem %s370_s16, 256  ;;  %p477_p6 = scmp.lt.s32.totalorder %s370_s16, %s370_s16 }
  0x14   :  { %97 = vmatpush1.msra.mxu0 %v50_v4  ;;  %184 = vmatpush1.msra.mxu1 %v160_v8  ;;  %v158_v13 = vld [vmem:[#allocation2 + $0x60] sm:$0xff]  ;;  %v155_v16 = vld [vmem:[#allocation2 + $0x48] sm:$0xff]  ;;  %v153_v18 = vld [vmem:[#allocation2 + $0x38] sm:$0xff]  ;;  %p473_p5 = scmp.ne.s32.totalorder %s370_s16, %s472_s17  ;;  %p478_p7 = scmp.lt.s32.totalorder %s472_s17, %s472_s17 }
  0x15   :  { %98 = vmatprep.subr.mxu0 %v49_v5  ;;  %185 = vmatprep.subr.mxu1 %v541_v0  ;;  %v154_v17 = vld [vmem:[#allocation2 + $0x40] sm:$0xff]  ;;  %v152_v19 = vld [vmem:[#allocation2 + $0x30] sm:$0xff]  ;;  %v151_v20 = vld [vmem:[#allocation2 + $0x28] sm:$0xff] }
  0x16   :  { %99 = vmatpush1.msra.mxu0 %v48_v6  ;;  %186 = vmatpush1.msra.mxu1 %v159_v11  ;;  %v150_v21 = vld [vmem:[#allocation2 + $0x20] sm:$0xff]  ;;  %v149_v22 = vld [vmem:[#allocation2 + $0x18] sm:$0xff]  ;;  %v148_v23 = vld [vmem:[#allocation2 + $0x10] sm:$0xff]  ;;  %p479_p8 = por %p478_p7, %p477_p6 }
  0x17   :  { %100 = vmatprep.subr.mxu0 %v47_v9  ;;  %187 = vmatprep.subr.mxu1 %v541_v0  ;;  %v147_v24 = vld [vmem:[#allocation2 + $0x8] sm:$0xff]  ;;  %v146_v25 = vld [vmem:[#allocation2] sm:$0xff]  ;;  %v169_v27 = vld [vmem:[#allocation2 + $0xb8] sm:$0xff] }
  0x18   :  { %101 = vmatpush1.msra.mxu0 %v46_v10  ;;  %188 = vmatpush1.msra.mxu1 %v158_v13  ;;  %v170_v26 = vld [vmem:[#allocation2 + $0xc0] sm:$0xff]  ;;  %v168_v28 = vld [vmem:[#allocation2 + $0xb0] sm:$0xff]  ;;  %v167_v29 = vld [vmem:[#allocation2 + $0xa8] sm:$0xff]  ;;  %p480_p9 = pnand %p479_p8, %p473_p5 }
  0x19   :  { %395 = vmatmul.mubr.msk.f32.vlgmr.msra.gmra.mxu0 %vm66_vm0, %v45_v12  ;;  %415 = vmatprep.subr.mxu0 %v541_v0  ;;  %v166_v30 = vld [vmem:[#allocation2 + $0xa0] sm:$0xff]  ;;  %v165_v31 = vld [vmem:[#allocation2 + $0x98] sm:$0xff]  ;;  %v164_v32 = vld [vmem:[#allocation2 + $0x90] sm:$0xff] }
  0x1a   :  { %189 = vmatprep.subr.mxu1 %v541_v0  ;;  %v163_v33 = vld [vmem:[#allocation2 + $0x88] sm:$0xff]  ;;  %v162_v34 = vld [vmem:[#allocation2 + $0x80] sm:$0xff]  ;;  %v265_v36 = vld [vmem:[%s728_s5 + $0x58] sm:$0xff]  ;;  %441 = vmatprep.mubr.msk.f32.mxu0 %vm542_vm3, %v541_v0 }
  0x1b   :  { %190 = vmatpush1.msra.mxu1 %v157_v14  ;;  %v266_v35 = vld [vmem:[%s728_s5 + $0x60] sm:$0xf]  ;;  %v264_v37 = vld [vmem:[%s728_s5 + $0x50] sm:$0xff]  ;;  %v263_v38 = vld [vmem:[%s728_s5 + $0x48] sm:$0xff] }
  0x1c   :  { %191 = vmatprep.subr.mxu1 %v541_v0  ;;  %416 = vmatpush3.msk.msra.mxu0 %vm277_vm1, %v266_v35  ;;  %v262_v39 = vld [vmem:[%s728_s5 + $0x40] sm:$0xff]  ;;  %v261_v40 = vld [vmem:[%s728_s5 + $0x38] sm:$0xff]  ;;  %v260_v41 = vld [vmem:[%s728_s5 + $0x30] sm:$0xff] }
  0x1d   :  { %192 = vmatpush1.msra.mxu1 %v156_v15  ;;  %417 = vmatprep.subr.mxu0 %v541_v0  ;;  %v259_v42 = vld [vmem:[%s728_s5 + $0x28] sm:$0xff]  ;;  %v258_v43 = vld [vmem:[%s728_s5 + $0x20] sm:$0xff]  ;;  %v257_v44 = vld [vmem:[%s728_s5 + $0x18] sm:$0xff] }
  0x1e   :  { %193 = vmatprep.subr.mxu1 %v541_v0  ;;  %418 = vmatpush3.msra.mxu0 %v265_v36  ;;  %v54_v48 = vld [vmem:[%s725_s2] sm:$0x3]  ;;  %v256_v58 = vld [vmem:[%s728_s5 + $0x10] sm:$0xff]  ;;  %v255_v59 = vld [vmem:[%s728_s5 + $0x8] sm:$0xff] }
  0x1f   :  { %194 = vmatpush1.msra.mxu1 %v155_v16  ;;  %419 = vmatprep.subr.mxu0 %v541_v0  ;;  %v59_v50 = vrot.slane %v54_v48, %v58_v47  ;;  %v63_v51 = vrot.slane %v54_v48, %v62_v49  ;;  %v254_v60 = vld [vmem:[%s728_s5] sm:$0xff] }
  0x20   :  { %195 = vmatprep.subr.mxu1 %v541_v0  ;;  %420 = vmatpush3.msra.mxu0 %v264_v37  ;;  %v396_v61 = vld [vmem:[%s727_s4] ss:$0 sm:$0xff] }
  0x21   :  { %196 = vmatpush1.msra.mxu1 %v154_v17  ;;  %421 = vmatprep.subr.mxu0 %v541_v0 }
  0x22   :  { %197 = vmatprep.subr.mxu1 %v541_v0  ;;  %422 = vmatpush3.msra.mxu0 %v263_v38 }
  0x23   :  { %198 = vmatpush1.msra.mxu1 %v153_v18  ;;  %423 = vmatprep.subr.mxu0 %v541_v0 }
  0x24   :  { %199 = vmatprep.subr.mxu1 %v541_v0  ;;  %424 = vmatpush3.msra.mxu0 %v262_v39 }
  0x25   :  { %200 = vmatpush1.msra.mxu1 %v152_v19  ;;  %425 = vmatprep.subr.mxu0 %v541_v0 }
  0x26   :  { %201 = vmatprep.subr.mxu1 %v541_v0  ;;  %426 = vmatpush3.msra.mxu0 %v261_v40 }
  0x27   :  { %202 = vmatpush1.msra.mxu1 %v151_v20  ;;  %427 = vmatprep.subr.mxu0 %v541_v0 }
  0x28   :  { %203 = vmatprep.subr.mxu1 %v541_v0  ;;  %428 = vmatpush3.msra.mxu0 %v260_v41 }
  0x29   :  { %204 = vmatpush1.msra.mxu1 %v150_v21  ;;  %429 = vmatprep.subr.mxu0 %v541_v0 }
  0x2a   :  { %205 = vmatprep.subr.mxu1 %v541_v0  ;;  %430 = vmatpush3.msra.mxu0 %v259_v42 }
  0x2b   :  { %206 = vmatpush1.msra.mxu1 %v149_v22  ;;  %431 = vmatprep.subr.mxu0 %v541_v0 }
  0x2c   :  { %207 = vmatprep.subr.mxu1 %v541_v0  ;;  %432 = vmatpush3.msra.mxu0 %v258_v43 }
  0x2d   :  { %208 = vmatpush1.msra.mxu1 %v148_v23  ;;  %433 = vmatprep.subr.mxu0 %v541_v0 }
  0x2e   :  { %209 = vmatprep.subr.mxu1 %v541_v0  ;;  %434 = vmatpush3.msra.mxu0 %v257_v44 }
  0x2f   :  { %210 = vmatpush1.msra.mxu1 %v147_v24  ;;  %435 = vmatprep.subr.mxu0 %v541_v0 }
  0x30   :  { %211 = vmatprep.subr.mxu1 %v541_v0  ;;  %436 = vmatpush3.msra.mxu0 %v256_v58 }
  0x31   :  { %212 = vmatpush1.msra.mxu1 %v146_v25  ;;  %437 = vmatprep.subr.mxu0 %v541_v0 }
  0x32   :  { %227 = vmatprep.subr.mxu1 %v541_v0  ;;  %438 = vmatpush3.msra.mxu0 %v255_v59 }
  0x33   :  { %228 = vmatpush2.msra.mxu1 %v170_v26  ;;  %439 = vmatprep.subr.mxu0 %v541_v0 }
  0x34   :  { %229 = vmatprep.subr.mxu1 %v541_v0  ;;  %440 = vmatpush3.msra.mxu0 %v254_v60 }
  0x35   :  { %230 = vmatpush2.msra.mxu1 %v169_v27 }
  0x36   :  { %231 = vmatprep.subr.mxu1 %v541_v0 }
  0x37   :  { %232 = vmatpush2.msra.mxu1 %v168_v28 }
  0x38   :  { %233 = vmatprep.subr.mxu1 %v541_v0 }
  0x39   :  { %234 = vmatpush2.msra.mxu1 %v167_v29 }
  0x3a   :  { %235 = vmatprep.subr.mxu1 %v541_v0 }
  0x3b   :  { %236 = vmatpush2.msra.mxu1 %v166_v30 }
  0x3c   :  { %237 = vmatprep.subr.mxu1 %v541_v0 }
  0x3d   :  { %238 = vmatpush2.msra.mxu1 %v165_v31 }
  0x3e   :  { %239 = vmatprep.subr.mxu1 %v541_v0 }
  0x3f   :  { %240 = vmatpush2.msra.mxu1 %v164_v32 }
  0x40   :  { %241 = vmatprep.subr.mxu1 %v541_v0 }
  0x41   :  { %242 = vmatpush2.msra.mxu1 %v163_v33 }
  0x42   :  { %243 = vmatprep.subr.mxu1 %v541_v0 }
  0x43   :  { %244 = vmatpush2.msra.mxu1 %v162_v34 }
  0xd9   :  { %v136_v52 = vpop.f32.mrf.mxu0 }
  0xda   :  { %v137_v53 = vadd.f32 %v136_v52, %v59_v50 }
  0xdb   :  { %v138_v54 = vpop.f32.mrf.mxu0 }
  0xdc   :  { %141 = vst [vmem:[#allocation6] sm:$0xff] %v137_v53  ;;  %v139_v55 = vadd.f32 %v138_v54, %v63_v51  ;;  %v144_v57 = vmax.f32 %v137_v53, 0.0 }
  0xde   :  { %143 = vst.msk [vmem:[#allocation6 + $0x8] sm:$0xff] %vm142_vm2, %v139_v55  ;;  %v145_v56 = vmax.f32 %v139_v55, 0.0 }
  0xe0   :  { %397 = vmatprep.mubr.msk.f32.mxu1 %vm142_vm2, %v145_v56 }
  0xe1   :  { %246 = vmatmul.mubr.f32.vlgmr.msra.gmra.mxu1 %v144_v57 }
 0x1a1   :  { %v247_v62 = vpop.f32.mrf.mxu1 }
 0x1a2   :  { %v248_v63 = vadd.f32 %v396_v61, %v247_v62 }
 0x1a3   :  { %v249_v1 = vpop.f32.mrf.mxu1 }
 0x1a4   :  { %v253_v2 = vmax.f32 %v248_v63, 0.0  ;;  %252 = vst.msk [vmem:[#allocation8] sm:$0xff] %vm251_vm4, %v248_v63 }
 0x1a6   :  { %442 = vmatmul.mubr.msk.f32.vlgmr.msra.gmra.mxu0 %vm251_vm4, %v253_v2 }
 0x1a7   :  { %483 = shalt.err (!%p480_p9)
}
 0x1a8   :  { %372 = dma.vmem_to_hbm [thread:$0]  %s370_s16, 256, %s731_s8, [#allocation7]  }
 0x1a9   :  { %s544_s4 = smov [#allocation8]  }
 0x1aa   :  { %s379_s19 = sshll.u32 %s544_s4, 4  ;;  %s380_s19 = int_to_ptr.vmem [resolvable:$true] %s379_s19 }
 0x1ab   :  { %s492_s20 = scalar_lea.vmem %s380_s19, 128  ;;  %p497_p11 = scmp.lt.s32.totalorder %s380_s19, %s380_s19 }
 0x1ac   :  { %p493_p10 = scmp.ne.s32.totalorder %s380_s19, %s492_s20  ;;  %p498_p12 = scmp.lt.s32.totalorder %s492_s20, %s492_s20 }
 0x1ae   :  { %p499_p13 = por %p498_p12, %p497_p11 }
 0x1b0   :  { %p500_p0 = pnand %p499_p13, %p493_p10 }
 0x1b2   :  { %503 = shalt.err (!%p500_p0)
}
 0x1b3   :  { %382 = dma.vmem_to_hbm [thread:$0]  %s380_s19, 128, %s732_s9, [#allocation7]   ;;  %v398_v0 = vld [vmem:[%s729_s6] ss:$0 sm:$0xff]  ;;  %vm351_vm5 = vcmask 80896  }
 0x1b4   :  { %s545_s24 = smov [#allocation5]  }
 0x1b5   :  { %s359_s8 = sshll.u32 %s545_s24, 4  ;;  %s360_s8 = int_to_ptr.vmem [resolvable:$true] %s359_s8 }
 0x1b6   :  { %s512_s25 = scalar_lea.vmem %s360_s8, 128  ;;  %p517_p2 = scmp.lt.s32.totalorder %s360_s8, %s360_s8 }
 0x1b7   :  { %p513_p1 = scmp.ne.s32.totalorder %s360_s8, %s512_s25  ;;  %p518_p3 = scmp.lt.s32.totalorder %s512_s25, %s512_s25 }
 0x1b9   :  { %p519_p4 = por %p518_p3, %p517_p2 }
 0x1bb   :  { %p520_p5 = pnand %p519_p4, %p513_p1 }
 0x266   :  { %v347_v3 = vpop.f32.mrf.mxu0 }
 0x267   :  { %v348_v4 = vadd.f32 %v398_v0, %v347_v3 }
 0x268   :  { %v443_v5 = vpop.f32.mrf.mxu0 }
 0x269   :  { %352 = vst.msk [vmem:[#allocation5] sm:$0xff] %vm351_vm5, %v348_v4 }
 0x26a   :  { %523 = shalt.err (!%p520_p5)
}
 0x26b   :  { %362 = dma.vmem_to_hbm [thread:$0]  %s360_s8, 128, %s730_s7, [#allocation4]  }
 0x26c   :  { %534 = dma.done.wait [#allocation4], 128  }
 0x26d   :  { %535 = vsyncadd [#allocation4], 4294967168 }
 0x26e   :  { %536 = dma.done.wait [#allocation7], 384  }
 0x26f   :  { %537 = vsyncadd [#allocation7], 4294966912 }
 0x270   :  { %392 = vsyncpa [#allocation3], 1 }
 0x271   :  { %393 = vsyncpa [#allocation4], 1 }
 0x272   :  { %394 = vsyncpa [#allocation7], 1 }

</bundles_post_ra>
